<compile_context>
chip_gen: v5e
topology: v5e:2x2
jax: 0.10.0
libtpu: 0.0.40
codegen_flags: <defaults>
</compile_context>

<pallas_src>
import functools

import jax
import jax.numpy as jnp
from jax import lax
from jax.experimental import pallas as pl
from jax.experimental.pallas import tpu as pltpu


def _round_up(x, m):
    return (x + m - 1) // m * m


def _moco_loss_kernel(q_ref, k_ref, loss_ref, gram_acc, qsq_acc, ksq_acc,
                      *, temperature, valid_b):
    """grid = (row tiles of q [parallel], tiles of the feature axis D [arbitrary])."""
    bt = pl.program_id(0)
    d = pl.program_id(1)

    @pl.when(d == 0)
    def _():
        gram_acc[...] = jnp.zeros_like(gram_acc)
        qsq_acc[...] = jnp.zeros_like(qsq_acc)
        ksq_acc[...] = jnp.zeros_like(ksq_acc)

    q = q_ref[...]                       # (TILE_B, TILE_D)
    k = k_ref[...]                       # (B_pad,  TILE_D)

    # Partial Gram matrix on the MXU, f32 accumulation.
    gram_acc[...] += lax.dot_general(
        q, k, (((1,), (1,)), ((), ())), preferred_element_type=jnp.float32)

    # Partial squared norms; elementwise math in f32 (v5e VPU has no bf16).
    qf = q.astype(jnp.float32)
    kf = k.astype(jnp.float32)
    qsq_acc[...] += jnp.sum(qf * qf, axis=1, keepdims=True)   # (TILE_B, 1)
    ksq_acc[...] += jnp.sum(kf * kf, axis=1, keepdims=True)   # (B_pad, 1)

    @pl.when(d == pl.num_programs(1) - 1)
    def _():
        tile_b, b_pad = gram_acc.shape
        eps = jnp.float32(1e-8)
        inv_t = jnp.float32(1.0 / temperature)
        neg_inf = jnp.float32(-1e30)

        # rsqrt (EUP slot) instead of sqrt + divides.  Per-vector clamp at eps
        # (product clamp at eps^2) — identical to PyTorch's max(||q||*||k||, eps)
        # except for degenerate near-zero-norm inputs.
        inv_nq = lax.rsqrt(jnp.maximum(qsq_acc[...], eps * eps))   # (TILE_B, 1)
        inv_nk = lax.rsqrt(jnp.maximum(ksq_acc[...], eps * eps))   # (B_pad, 1)

        # (1/(T*||q_i||)) * (1/||k_j||) as a rank-1 outer product.  One tiny K=1
        # MXU pass *once per row tile* (epilogue only); it folds normalization and
        # temperature into a single (TILE_B, B_pad) multiply — no (B,B) divide,
        # no (B,B) maximum, no separate temperature scale.
        inv_scale = lax.dot_general(
            inv_nq * inv_t, inv_nk, (((1,), (1,)), ((), ())),
            preferred_element_type=jnp.float32)                    # (TILE_B, B_pad)

        logits_neg = gram_acc[...] * inv_scale                     # (TILE_B, B_pad)

        row_ids = lax.broadcasted_iota(jnp.int32, (tile_b, b_pad), 0)
        col_ids = lax.broadcasted_iota(jnp.int32, (tile_b, b_pad), 1)

        # Positive logit = diagonal of the already-scaled similarity matrix
        # (no O(B*D) recomputation of sum(q*k)).
        diag_mask = col_ids == (row_ids + bt * tile_b)
        logits_pos = jnp.sum(jnp.where(diag_mask, logits_neg, 0.0),
                             axis=1, keepdims=True)                # (TILE_B, 1)

        # Mask out the padded k rows (columns >= real batch size).
        neg_masked = jnp.where(col_ids < valid_b, logits_neg, neg_inf)

        # Cross-entropy with target class 0:  loss_i = LSE(row_i) - row_i[0].
        row_max = jnp.maximum(logits_pos,
                              jnp.max(neg_masked, axis=1, keepdims=True))
        sum_exp = (jnp.exp(logits_pos - row_max)
                   + jnp.sum(jnp.exp(neg_masked - row_max), axis=1, keepdims=True))
        loss_ref[...] = row_max + jnp.log(sum_exp) - logits_pos    # (TILE_B, 1)


def moco_loss(feat_q, feat_k, idx=None, *, temperature=0.07, max_tile_d=2048):
    """MocoLoss.forward, K == 0 / use_queue=False hot path.

    `idx` is kept for API parity with the PyTorch module; it is only used by the
    (untranslated) queue bookkeeping.
    """
    assert feat_q.shape == feat_k.shape, (feat_q.shape, feat_k.shape)
    b = feat_q.shape[0]
    q2 = feat_q.reshape(b, -1)
    k2 = lax.stop_gradient(feat_k.reshape(b, -1))   # feat_k.detach()
    d = q2.shape[1]

    # ---- padding / tiling --------------------------------------------------
    # B padded to a sublane multiple; rows tiled at <=128 so the "parallel" axis
    # gives v7x's 2nd TensorCore work for realistic batches (neutral on v5e/v6e).
    b_pad = _round_up(b, 8)
    tile_b = min(b_pad, 128)
    b_pad = _round_up(b_pad, tile_b)
    # Feature axis padded to 128 lanes and tiled -> pipelined D reduction.
    d_pad = _round_up(d, 128)
    tile_d = min(d_pad, max_tile_d)
    d_pad = _round_up(d_pad, tile_d)

    if (b_pad, d_pad) != (b, d):
        q2 = jnp.pad(q2, ((0, b_pad - b), (0, d_pad - d)))
        k2 = jnp.pad(k2, ((0, b_pad - b), (0, d_pad - d)))

    n_bt = b_pad // tile_b
    n_dt = d_pad // tile_d

    # Explicit VMEM budget (double-buffered input tiles + f32 accumulators),
    # sized so it stays valid on v7x's 64 MiB VMEM as well as v5e/v6e.
    itemsize = jnp.dtype(q2.dtype).itemsize
    vmem_bytes = (2 * 2 * (tile_b + b_pad) * tile_d * itemsize    # q/k tiles, 2 bufs
                  + 4 * (tile_b * b_pad + tile_b + b_pad)         # f32 scratch
                  + 4 * 2 * tile_b)                               # per-row loss out
    vmem_limit = int(min(max(vmem_bytes + (4 << 20), 16 << 20), 96 << 20))

    kernel = functools.partial(_moco_loss_kernel,
                               temperature=float(temperature), valid_b=b)

    per_row = pl.pallas_call(
        kernel,
        out_shape=jax.ShapeDtypeStruct((b_pad, 1), jnp.float32),
        grid_spec=pltpu.PrefetchScalarGridSpec(
            num_scalar_prefetch=0,
            grid=(n_bt, n_dt),
            in_specs=[
                pl.BlockSpec((tile_b, tile_d), lambda bt, dt: (bt, dt)),   # q rows
                pl.BlockSpec((b_pad, tile_d), lambda bt, dt: (0, dt)),     # all of k
            ],
            out_specs=pl.BlockSpec((tile_b, 1), lambda bt, dt: (bt, 0)),
            scratch_shapes=[
                pltpu.VMEM((tile_b, b_pad), jnp.float32),   # Gram accumulator
                pltpu.VMEM((tile_b, 1), jnp.float32),       # sum(q*q) accumulator
                pltpu.VMEM((b_pad, 1), jnp.float32),        # sum(k*k) accumulator
            ]),
        compiler_params=pltpu.CompilerParams(
            dimension_semantics=("parallel", "arbitrary"),
            vmem_limit_bytes=vmem_limit),
    )(q2, k2)

    # Mean over the real batch rows (padded rows discarded).
    return jnp.mean(per_row[:b, 0])


def _reference_loss(feat_q, feat_k, temperature=0.07):
    """Plain-JAX reference mirroring the PyTorch module (K == 0 path)."""
    b = feat_q.shape[0]
    q = feat_q.reshape(b, -1).astype(jnp.float32)
    k = feat_k.reshape(b, -1).astype(jnp.float32)
    eps = 1e-8
    nq = jnp.linalg.norm(q, axis=1)
    nk = jnp.linalg.norm(k, axis=1)
    l_pos = jnp.sum(q * k, axis=1) / jnp.maximum(nq * nk, eps)
    l_neg = (q @ k.T) / jnp.maximum(nq[:, None] * nk[None, :], eps)
    out = jnp.concatenate([l_pos[:, None], l_neg], axis=1) / temperature
    lse = jax.nn.logsumexp(out, axis=1)
    return jnp.mean(lse - out[:, 0])


if __name__ == "__main__":
    key = jax.random.PRNGKey(0)
    kq, kk = jax.random.split(key)
    B, C, H, W = 2, 4, 16, 16          # small shapes; D = C*H*W = 1024
    feat_q = jax.random.normal(kq, (B, C, H, W), dtype=jnp.float32)
    feat_k = jax.random.normal(kk, (B, C, H, W), dtype=jnp.float32)
    idx = jnp.arange(B, dtype=jnp.int32)

    loss = moco_loss(feat_q, feat_k, idx, temperature=0.07)
    loss = jax.block_until_ready(loss)

    ref = _reference_loss(feat_q, feat_k, temperature=0.07)
    assert jnp.allclose(loss, ref, rtol=1e-5, atol=1e-5), (loss, ref)

    print("KERNEL_OK")
</pallas_src>

<mosaic_0001>
module attributes {stable_mosaic.version = 11 : i64} {
  func.func @_moco_loss_kernel(%arg0: i32, %arg1: i32, %arg2: memref<8x1024xf32, #tpu.memory_space<vmem>>, %arg3: memref<8x1024xf32, #tpu.memory_space<vmem>>, %arg4: memref<8x1xf32, #tpu.memory_space<vmem>>, %arg5: memref<8x8xf32, #tpu.memory_space<vmem>>, %arg6: memref<8x1xf32, #tpu.memory_space<vmem>>, %arg7: memref<8x1xf32, #tpu.memory_space<vmem>>) attributes {dimension_semantics = [#tpu.dimension_semantics<parallel>, #tpu.dimension_semantics<arbitrary>], iteration_bounds = array<i64: 1, 1>, scalar_prefetch = 0 : i64, scratch_operands = 3 : i64, tpu.core_type = #tpu.core_type<tc>, window_params = [{transform_indices = @transform_0, window_bounds = array<i64: 8, 1024>}, {transform_indices = @transform_1, window_bounds = array<i64: 8, 1024>}, {transform_indices = @transform_2, window_bounds = array<i64: 8, 1>}]} {
    %c0_i32 = arith.constant 0 : i32
    %0 = arith.cmpi eq, %arg1, %c0_i32 : i32
    %1 = arith.extui %0 : i1 to i32
    %c0_i32_0 = arith.constant 0 : i32
    %2 = arith.cmpi ne, %1, %c0_i32_0 : i32
    scf.if %2 {
      %cst_20 = arith.constant 0.000000e+00 : f32
      %24 = vector.broadcast %cst_20 : f32 to vector<8x8xf32>
      %c0_21 = arith.constant 0 : index
      %c0_22 = arith.constant 0 : index
      %25 = vector.load %arg5[%c0_21, %c0_22] : memref<8x8xf32, #tpu.memory_space<vmem>>, vector<8x8xf32>
      tpu.vector_store %arg5[%c0_21, %c0_22], %24 {strides = array<i32>} : memref<8x8xf32, #tpu.memory_space<vmem>>, vector<8x8xf32>,
      %cst_23 = arith.constant 0.000000e+00 : f32
      %26 = vector.broadcast %cst_23 : f32 to vector<8x1xf32>
      %c0_24 = arith.constant 0 : index
      %c0_25 = arith.constant 0 : index
      %27 = vector.load %arg6[%c0_24, %c0_25] : memref<8x1xf32, #tpu.memory_space<vmem>>, vector<8x1xf32>
      tpu.vector_store %arg6[%c0_24, %c0_25], %26 {strides = array<i32>} : memref<8x1xf32, #tpu.memory_space<vmem>>, vector<8x1xf32>,
      %cst_26 = arith.constant 0.000000e+00 : f32
      %28 = vector.broadcast %cst_26 : f32 to vector<8x1xf32>
      %c0_27 = arith.constant 0 : index
      %c0_28 = arith.constant 0 : index
      %29 = vector.load %arg7[%c0_27, %c0_28] : memref<8x1xf32, #tpu.memory_space<vmem>>, vector<8x1xf32>
      tpu.vector_store %arg7[%c0_27, %c0_28], %28 {strides = array<i32>} : memref<8x1xf32, #tpu.memory_space<vmem>>, vector<8x1xf32>,
    } else {
    }
    %c0 = arith.constant 0 : index
    %c0_1 = arith.constant 0 : index
    %3 = vector.load %arg2[%c0, %c0_1] : memref<8x1024xf32, #tpu.memory_space<vmem>>, vector<8x1024xf32>
    %c0_2 = arith.constant 0 : index
    %c0_3 = arith.constant 0 : index
    %4 = vector.load %arg3[%c0_2, %c0_3] : memref<8x1024xf32, #tpu.memory_space<vmem>>, vector<8x1024xf32>
    %c0_4 = arith.constant 0 : index
    %c0_5 = arith.constant 0 : index
    %5 = vector.load %arg5[%c0_4, %c0_5] : memref<8x8xf32, #tpu.memory_space<vmem>>, vector<8x8xf32>
    %cst = arith.constant dense<0.000000e+00> : vector<8x8xf32>
    %6 = tpu.matmul %3, %4, %cst {dimension_numbers = #tpu.dot_dimension_numbers<[1], [1], [0], [0], [0, 0, 1, 0], [], []>} : vector<8x1024xf32>, vector<8x1024xf32>, vector<8x8xf32> -> vector<8x8xf32>
    %7 = arith.addf %5, %6 : vector<8x8xf32>
    %c0_6 = arith.constant 0 : index
    %c0_7 = arith.constant 0 : index
    %8 = vector.load %arg5[%c0_6, %c0_7] : memref<8x8xf32, #tpu.memory_space<vmem>>, vector<8x8xf32>
    tpu.vector_store %arg5[%c0_6, %c0_7], %7 {strides = array<i32>} : memref<8x8xf32, #tpu.memory_space<vmem>>, vector<8x8xf32>,
    %c0_8 = arith.constant 0 : index
    %c0_9 = arith.constant 0 : index
    %9 = vector.load %arg6[%c0_8, %c0_9] : memref<8x1xf32, #tpu.memory_space<vmem>>, vector<8x1xf32>
    %10 = arith.mulf %3, %3 : vector<8x1024xf32>
    %cst_10 = arith.constant dense<0.000000e+00> : vector<8xf32>
    %11 = vector.multi_reduction <add>, %10, %cst_10 [1] : vector<8x1024xf32> to vector<8xf32>
    %12 = vector.shape_cast %11 : vector<8xf32> to vector<8x1xf32>
    %13 = arith.addf %9, %12 : vector<8x1xf32>
    %c0_11 = arith.constant 0 : index
    %c0_12 = arith.constant 0 : index
    %14 = vector.load %arg6[%c0_11, %c0_12] : memref<8x1xf32, #tpu.memory_space<vmem>>, vector<8x1xf32>
    tpu.vector_store %arg6[%c0_11, %c0_12], %13 {strides = array<i32>} : memref<8x1xf32, #tpu.memory_space<vmem>>, vector<8x1xf32>,
    %c0_13 = arith.constant 0 : index
    %c0_14 = arith.constant 0 : index
    %15 = vector.load %arg7[%c0_13, %c0_14] : memref<8x1xf32, #tpu.memory_space<vmem>>, vector<8x1xf32>
    %16 = arith.mulf %4, %4 : vector<8x1024xf32>
    %cst_15 = arith.constant dense<0.000000e+00> : vector<8xf32>
    %17 = vector.multi_reduction <add>, %16, %cst_15 [1] : vector<8x1024xf32> to vector<8xf32>
    %18 = vector.shape_cast %17 : vector<8xf32> to vector<8x1xf32>
    %19 = arith.addf %15, %18 : vector<8x1xf32>
    %c0_16 = arith.constant 0 : index
    %c0_17 = arith.constant 0 : index
    %20 = vector.load %arg7[%c0_16, %c0_17] : memref<8x1xf32, #tpu.memory_space<vmem>>, vector<8x1xf32>
    tpu.vector_store %arg7[%c0_16, %c0_17], %19 {strides = array<i32>} : memref<8x1xf32, #tpu.memory_space<vmem>>, vector<8x1xf32>,
    %c0_i32_18 = arith.constant 0 : i32
    %21 = arith.cmpi eq, %arg1, %c0_i32_18 : i32
    %22 = arith.extui %21 : i1 to i32
    %c0_i32_19 = arith.constant 0 : i32
    %23 = arith.cmpi ne, %22, %c0_i32_19 : i32
    scf.if %23 {
      %c0_20 = arith.constant 0 : index
      %c0_21 = arith.constant 0 : index
      %24 = vector.load %arg6[%c0_20, %c0_21] : memref<8x1xf32, #tpu.memory_space<vmem>>, vector<8x1xf32>
      %cst_22 = arith.constant 9.99999993E-9 : f32
      %cst_23 = arith.constant 9.99999993E-9 : f32
      %25 = arith.mulf %cst_22, %cst_23 : f32
      %26 = vector.broadcast %25 : f32 to vector<8x1xf32>
      %27 = arith.maximumf %24, %26 : vector<8x1xf32>
      %28 = math.rsqrt %27 : vector<8x1xf32>
      %c0_24 = arith.constant 0 : index
      %c0_25 = arith.constant 0 : index
      %29 = vector.load %arg7[%c0_24, %c0_25] : memref<8x1xf32, #tpu.memory_space<vmem>>, vector<8x1xf32>
      %cst_26 = arith.constant 9.99999993E-9 : f32
      %cst_27 = arith.constant 9.99999993E-9 : f32
      %30 = arith.mulf %cst_26, %cst_27 : f32
      %31 = vector.broadcast %30 : f32 to vector<8x1xf32>
      %32 = arith.maximumf %29, %31 : vector<8x1xf32>
      %33 = math.rsqrt %32 : vector<8x1xf32>
      %cst_28 = arith.constant 14.2857141 : f32
      %34 = vector.broadcast %cst_28 : f32 to vector<8x1xf32>
      %35 = arith.mulf %28, %34 : vector<8x1xf32>
      %cst_29 = arith.constant dense<0.000000e+00> : vector<8x8xf32>
      %36 = tpu.matmul %35, %33, %cst_29 {dimension_numbers = #tpu.dot_dimension_numbers<[1], [1], [0], [0], [0, 0, 1, 0], [], []>} : vector<8x1xf32>, vector<8x1xf32>, vector<8x8xf32> -> vector<8x8xf32>
      %c0_30 = arith.constant 0 : index
      %c0_31 = arith.constant 0 : index
      %37 = vector.load %arg5[%c0_30, %c0_31] : memref<8x8xf32, #tpu.memory_space<vmem>>, vector<8x8xf32>
      %38 = arith.mulf %37, %36 : vector<8x8xf32>
      %39 = tpu.iota {dimensions = array<i32: 0>} : vector<8x8xi32>
      %40 = tpu.iota {dimensions = array<i32: 1>} : vector<8x8xi32>
      %c8_i32 = arith.constant 8 : i32
      %41 = arith.muli %arg0, %c8_i32 : i32
      %42 = vector.broadcast %41 : i32 to vector<8x8xi32>
      %43 = arith.addi %39, %42 : vector<8x8xi32>
      %44 = arith.cmpi eq, %40, %43 : vector<8x8xi32>
      %cst_32 = arith.constant 0.000000e+00 : f32
      %45 = vector.broadcast %cst_32 : f32 to vector<8x8xf32>
      %46 = arith.select %44, %38, %45 : vector<8x8xi1>, vector<8x8xf32>
      %cst_33 = arith.constant dense<0.000000e+00> : vector<8xf32>
      %47 = vector.multi_reduction <add>, %46, %cst_33 [1] : vector<8x8xf32> to vector<8xf32>
      %48 = vector.shape_cast %47 : vector<8xf32> to vector<8x1xf32>
      %c2_i32 = arith.constant 2 : i32
      %49 = vector.broadcast %c2_i32 : i32 to vector<8x8xi32>
      %50 = arith.cmpi slt, %40, %49 : vector<8x8xi32>
      %cst_34 = arith.constant -1.000000e+30 : f32
      %51 = vector.broadcast %cst_34 : f32 to vector<8x8xf32>
      %52 = arith.select %50, %38, %51 : vector<8x8xi1>, vector<8x8xf32>
      %cst_35 = arith.constant dense<0xFF800000> : vector<8xf32>
      %53 = vector.multi_reduction <maximumf>, %52, %cst_35 [1] : vector<8x8xf32> to vector<8xf32>
      %54 = vector.shape_cast %53 : vector<8xf32> to vector<8x1xf32>
      %55 = arith.maximumf %48, %54 : vector<8x1xf32>
      %56 = arith.subf %48, %55 : vector<8x1xf32>
      %57 = math.exp %56 : vector<8x1xf32>
      %58 = vector.broadcast %55 : vector<8x1xf32> to vector<8x8xf32>
      %59 = arith.subf %52, %58 : vector<8x8xf32>
      %60 = math.exp %59 : vector<8x8xf32>
      %cst_36 = arith.constant dense<0.000000e+00> : vector<8xf32>
      %61 = vector.multi_reduction <add>, %60, %cst_36 [1] : vector<8x8xf32> to vector<8xf32>
      %62 = vector.shape_cast %61 : vector<8xf32> to vector<8x1xf32>
      %63 = arith.addf %57, %62 : vector<8x1xf32>
      %64 = math.log %63 : vector<8x1xf32>
      %65 = arith.addf %55, %64 : vector<8x1xf32>
      %66 = arith.subf %65, %48 : vector<8x1xf32>
      %c0_37 = arith.constant 0 : index
      %c0_38 = arith.constant 0 : index
      %67 = vector.load %arg4[%c0_37, %c0_38] : memref<8x1xf32, #tpu.memory_space<vmem>>, vector<8x1xf32>
      tpu.vector_store %arg4[%c0_37, %c0_38], %66 {strides = array<i32>} : memref<8x1xf32, #tpu.memory_space<vmem>>, vector<8x1xf32>,
    } else {
    }
    return
  }
  func.func @transform_0(%arg0: i32, %arg1: i32) -> (i32, i32) {
    %c0_i32 = arith.constant 0 : i32
    return %arg0, %arg1 : i32, i32
  }
  func.func @transform_1(%arg0: i32, %arg1: i32) -> (i32, i32) {
    %c0_i32 = arith.constant 0 : i32
    %c0_i32_0 = arith.constant 0 : i32
    return %c0_i32, %arg1 : i32, i32
  }
  func.func @transform_2(%arg0: i32, %arg1: i32) -> (i32, i32) {
    %c0_i32 = arith.constant 0 : i32
    %c0_i32_0 = arith.constant 0 : i32
    return %arg0, %c0_i32 : i32, i32
  }
}

</mosaic_0001>

<bundles_post_ra>
// kernel: tpu_custom_call.1
= control target key start
LH: loop header
LB: loop body
LE: loop exit
PB: predicated region body
PF: predicated region fallthrough
CT: control target
= control target key end

     0   :  { %7 = vsyncpa [#allocation6], 0  ;;  %s473_s0 = inlined_call_operand.hbm [shape: f32[8,1024], index: 0, kind: input, shape index: {}]   ;;  %s474_s1 = inlined_call_operand.hbm [shape: f32[8,1024], index: 1, kind: input, shape index: {}]   ;;  %s475_s2 = inlined_call_operand.vmem [shape: f32[8,1], index: 2, kind: output, shape index: {}]  }
   0x1   :  { %s14_s11 = sshll.u32 %s473_s0, 4  ;;  %s15_s11 = int_to_ptr.hbm [resolvable:$true] %s14_s11 }
   0x2   :  { %8 = vsyncpa [#allocation8], 0  ;;  %s431_s12 = smov [#allocation5]   ;;  %s25_s16 = sshll.u32 %s474_s1, 4  ;;  %s26_s16 = int_to_ptr.hbm [resolvable:$true] %s25_s16 }
   0x3   :  { %s16_s13 = sshll.u32 %s431_s12, 4  ;;  %s432_s17 = smov [#allocation7]   ;;  %s17_s13 = int_to_ptr.vmem [resolvable:$true] %s16_s13 }
   0x4   :  { %19 = dma.hbm_to_vmem [thread:$0]  %s15_s11, 1024, %s17_s13, [#allocation6]  }
   0x5   :  { %s27_s18 = sshll.u32 %s432_s17, 4  ;;  %s28_s18 = int_to_ptr.vmem [resolvable:$true] %s27_s18 }
   0x6   :  { %30 = dma.hbm_to_vmem [thread:$0]  %s26_s16, 1024, %s28_s18, [#allocation8]  }
   0x7   :  { %427 = dma.done.wait [#allocation6], 1024  }
   0x8   :  { %428 = vsyncadd [#allocation6], 4294966272 }
   0x9   :  { %429 = dma.done.wait [#allocation8], 1024  }
   0xa   :  { %430 = vsyncadd [#allocation8], 4294966272  ;;  %vm45_vm0 = vcmask 7168   ;;  %v433_v0 = vmov 0.0   ;;  %v56_v1 = vld [vmem:[#allocation7] sm:$0xff]  ;;  %v57_v2 = vld [vmem:[#allocation7 + $0x8] sm:$0xff] }
   0xb   :  { %47 = vst.msk [vmem:[#allocation4] sm:$0xff] %vm45_vm0, %v433_v0  ;;  %v58_v3 = vld [vmem:[#allocation7 + $0x10] sm:$0xff]  ;;  %v59_v4 = vld [vmem:[#allocation7 + $0x18] sm:$0xff]  ;;  %v250_v5 = vmul.f32 %v56_v1, %v56_v1  ;;  %v251_v6 = vmul.f32 %v57_v2, %v57_v2  ;;  %80 = vmatpush.xpose.msra.mxu0 %v56_v1  ;;  %v60_v8 = vld [vmem:[#allocation7 + $0x20] sm:$0xff]  ;;  %100 = vmatpush.xpose.msra.mxu1 %v57_v2  ;;  %vm43_vm1 = vcmask 64512  }
   0xc   :  { %46 = vst.msk [vmem:[#allocation3] sm:$0xff] %vm45_vm0, %v433_v0  ;;  %v252_v7 = vmul.f32 %v58_v3, %v58_v3  ;;  %120 = vmatpush.xpose.msra.mxu2 %v58_v3  ;;  %v62_v9 = vld [vmem:[#allocation7 + $0x30] sm:$0xff]  ;;  %v48_v10 = vld [vmem:[#allocation5] sm:$0xff]  ;;  %140 = vmatpush.xpose.msra.mxu3 %v59_v4  ;;  %v253_v11 = vmul.f32 %v59_v4, %v59_v4  ;;  %v49_v13 = vld [vmem:[#allocation5 + $0x8] sm:$0xff] }
   0xd   :  { %v258_v12 = vadd.f32 %v251_v6, %v250_v5  ;;  %v50_v14 = vld [vmem:[#allocation5 + $0x10] sm:$0xff]  ;;  %v51_v15 = vld [vmem:[#allocation5 + $0x18] sm:$0xff]  ;;  %v229_v16 = vmul.f32 %v48_v10, %v48_v10  ;;  %v61_v17 = vld [vmem:[#allocation7 + $0x28] sm:$0xff]  ;;  %v230_v18 = vmul.f32 %v49_v13, %v49_v13  ;;  %v254_v20 = vmul.f32 %v60_v8, %v60_v8  ;;  %44 = vst.msk [vmem:[#allocation2] sm:$0xff] %vm43_vm1, %v433_v0 }
   0xe   :  { %v231_v19 = vmul.f32 %v50_v14, %v50_v14  ;;  %81 = vmatmul.f32.vlgmr.msra.gmra.mxu0 %v48_v10  ;;  %v52_v22 = vld [vmem:[#allocation5 + $0x20] sm:$0xff]  ;;  %v63_v23 = vld [vmem:[#allocation7 + $0x38] sm:$0xff]  ;;  %v232_v24 = vmul.f32 %v51_v15, %v51_v15  ;;  %101 = vmatmul.f32.vlgmr.msra.gmra.mxu1 %v49_v13  ;;  %v255_v26 = vmul.f32 %v61_v17, %v61_v17  ;;  %v53_v28 = vld [vmem:[#allocation5 + $0x28] sm:$0xff] }
   0xf   :  { %121 = vmatmul.f32.vlgmr.msra.gmra.mxu2 %v50_v14  ;;  %v259_v21 = vadd.f32 %v258_v12, %v252_v7  ;;  %141 = vmatmul.f32.vlgmr.msra.gmra.mxu3 %v51_v15  ;;  %v237_v25 = vadd.f32 %v230_v18, %v229_v16  ;;  %v233_v29 = vmul.f32 %v52_v22, %v52_v22  ;;  %v54_v33 = vld [vmem:[#allocation5 + $0x30] sm:$0xff]  ;;  %v55_v38 = vld [vmem:[#allocation5 + $0x38] sm:$0xff] }
  0x10   :  { %200 = vmatpush.xpose.msrb.mxu2 %v62_v9  ;;  %160 = vmatpush.xpose.msrb.mxu0 %v60_v8  ;;  %v256_v31 = vmul.f32 %v62_v9, %v62_v9  ;;  %v234_v34 = vmul.f32 %v53_v28, %v53_v28  ;;  %v257_v36 = vmul.f32 %v63_v23, %v63_v23 }
  0x11   :  { %v260_v27 = vadd.f32 %v259_v21, %v253_v11  ;;  %220 = vmatpush.xpose.msrb.mxu3 %v63_v23  ;;  %180 = vmatpush.xpose.msrb.mxu1 %v61_v17  ;;  %v238_v30 = vadd.f32 %v237_v25, %v231_v19  ;;  %v235_v41 = vmul.f32 %v54_v33, %v54_v33  ;;  %v325_v25 = vlaneseq }
  0x12   :  { %v236_v44 = vmul.f32 %v55_v38, %v55_v38  ;;  %v249_v47 = vld [vmem:[#allocation4] sm:$0xff] }
  0x13   :  { %v261_v32 = vadd.f32 %v260_v27, %v254_v20  ;;  %v239_v35 = vadd.f32 %v238_v30, %v232_v24  ;;  %v228_v50 = vld [vmem:[#allocation3] sm:$0xff]  ;;  %v328_v27 = vand.u32 127, %v325_v25 }
  0x14   :  { %v64_v10 = vld [vmem:[#allocation2] sm:$0xff] }
  0x15   :  { %v262_v37 = vadd.f32 %v261_v32, %v255_v26  ;;  %v240_v39 = vadd.f32 %v239_v35, %v233_v29  ;;  %v326_v26 = vshrl.u32 %v325_v25, 7  ;;  %vm337_vm9 = vcmp.lt.s32.totalorder %v328_v27, 2 }
  0x16   :  { %161 = vmatmul.f32.vlgmr.msrb.gmra.mxu0 %v52_v22  ;;  %181 = vmatmul.f32.vlgmr.msrb.gmra.mxu1 %v53_v28 }
  0x17   :  { %201 = vmatmul.f32.vlgmr.msrb.gmra.mxu2 %v54_v33  ;;  %v263_v40 = vadd.f32 %v262_v37, %v256_v31  ;;  %221 = vmatmul.f32.vlgmr.msrb.gmra.mxu3 %v55_v38  ;;  %v241_v42 = vadd.f32 %v240_v39, %v234_v34  ;;  %vm332_vm8 = vcmp.eq.s32.totalorder %v328_v27, %v326_v26 }
  0x19   :  { %v264_v43 = vadd.f32 %v263_v40, %v257_v36  ;;  %v242_v45 = vadd.f32 %v241_v42, %v235_v41 }
  0x1b   :  { %265 = vadd.xlane.f32.xlu0 %v264_v43  ;;  %v243_v46 = vadd.f32 %v242_v45, %v236_v44 }
  0x23   :  { %244 = vadd.xlane.f32.xlu0 %v243_v46 }
  0x8b   :  { %v82_v53 = vpop.f32.mrf.mxu0  ;;  %v102_v54 = vpop.f32.mrf.mxu1 }
  0x8c   :  { %v103_v56 = vadd.f32 %v102_v54, %v82_v53 }
  0x8e   :  { %v266_v48 = vpop.xlane.xlu0 %265 }
  0x8f   :  { %v267_v49 = vadd.f32 %v266_v48, %v249_v47 }
  0x91   :  { %268 = vst.msk [vmem:[#allocation4] sm:$0xff] %vm45_vm0, %v267_v49 }
  0x92   :  { %v122_v57 = vpop.f32.mrf.mxu2  ;;  %v142_v59 = vpop.f32.mrf.mxu3 }
  0x93   :  { %v123_v60 = vadd.f32 %v122_v57, %v103_v56  ;;  %v162_v62 = vpop.f32.mrf.mxu0  ;;  %v182_v63 = vpop.f32.mrf.mxu1 }
  0x95   :  { %v143_v61 = vadd.f32 %v142_v59, %v123_v60 }
  0x96   :  { %v245_v51 = vpop.xlane.xlu0 %244 }
  0x97   :  { %v246_v52 = vadd.f32 %v245_v51, %v228_v50  ;;  %v163_v2 = vadd.f32 %v162_v62, %v143_v61 }
  0x98   :  { %v284_v55 = vld [vmem:[#allocation4] sm:$0xff] }
  0x99   :  { %248 = vst.msk [vmem:[#allocation3] sm:$0xff] %vm45_vm0, %v246_v52  ;;  %v285_v58 = vmax.f32 %v284_v55, 1e-16  ;;  %v183_v7 = vadd.f32 %v182_v63, %v163_v2 }
  0x9a   :  { %v202_v5 = vpop.f32.mrf.mxu2  ;;  %v222_v8 = vpop.f32.mrf.mxu3 }
  0x9b   :  { %369 = vrsqrt.f32 %v285_v58  ;;  %v203_v0 = vadd.f32 %v202_v5, %v183_v7  ;;  %vm292_vm3 = vweird.f32 %v285_v58 }
  0x9d   :  { %v223_v12 = vadd.f32 %v222_v8, %v203_v0 }
  0x9f   :  { %v225_v14 = vadd.f32 %v223_v12, %v64_v10 }
  0xa0   :  { %v272_v1 = vld [vmem:[#allocation3] sm:$0xff] }
  0xa1   :  { %v370_v3 = vpop.eup %369  ;;  %v273_v4 = vmax.f32 %v272_v1, 1e-16  ;;  %227 = vst.msk [vmem:[#allocation2] sm:$0xff] %vm43_vm1, %v225_v14 }
  0xa2   :  { %v287_v6 = vmul.f32 %v370_v3, %v285_v58  ;;  %vm293_vm2 = vweird.f32 %v370_v3 }
  0xa3   :  { %371 = vrsqrt.f32 %v273_v4  ;;  %vm294_vm4 = vmor %vm292_vm3, %vm293_vm2  ;;  %vm280_vm6 = vweird.f32 %v273_v4 }
  0xa4   :  { %v288_v9 = vmul.f32 %v370_v3, %v287_v6 }
  0xa6   :  { %v289_v11 = vmul.f32 0.5, %v288_v9 }
  0xa8   :  { %v290_v13 = vsub.f32 1.5, %v289_v11  ;;  %v323_v29 = vld [vmem:[#allocation2] sm:$0xff] }
  0xa9   :  { %v372_v15 = vpop.eup %371 }
  0xaa   :  { %v291_v16 = vmul.f32 %v370_v3, %v290_v13  ;;  %v275_v17 = vmul.f32 %v372_v15, %v273_v4  ;;  %vm281_vm5 = vweird.f32 %v372_v15 }
  0xab   :  { %vm282_vm7 = vmor %vm280_vm6, %vm281_vm5 }
  0xac   :  { %v295_v18 = vsel %vm294_vm4, %v370_v3, %v291_v16  ;;  %v276_v19 = vmul.f32 %v372_v15, %v275_v17 }
  0xad   :  { %364 = vmatpush.xpose.msk.msra.mxu0 %vm45_vm0, %v295_v18 }
  0xae   :  { %v277_v20 = vmul.f32 0.5, %v276_v19 }
  0xb0   :  { %v278_v21 = vsub.f32 1.5, %v277_v20 }
  0xb2   :  { %v279_v22 = vmul.f32 %v372_v15, %v278_v21 }
  0xb4   :  { %v283_v23 = vsel %vm282_vm7, %v372_v15, %v279_v22 }
  0xb5   :  { %v296_v24 = vmul.f32 14.285714, %v283_v23 }
  0xb7   :  { %365 = vmatmul.msk.f32.vlgmr.msra.gmra.mxu0 %vm45_vm0, %v296_v24 }
 0x134   :  { %v320_v28 = vpop.f32.mrf.mxu0 }
 0x135   :  { %v324_v30 = vmul.f32 %v323_v29, %v320_v28 }
 0x137   :  { %v333_v31 = vsel %vm332_vm8, %v324_v30, 0.0  ;;  %v338_v33 = vsel %vm337_vm9, %v324_v30, -1e+30 }
 0x138   :  { %v334_v32 = vsel %vm43_vm1, %v333_v31, 0.0  ;;  %v339_v34 = vsel %vm43_vm1, %v338_v33, -inf }
 0x139   :  { %335 = vadd.xlane.f32.xlu1 %v334_v32 }
 0x141   :  { %340 = vmax.xlane.f32.xlu1 %v339_v34 }
 0x1ac   :  { %v336_v35 = vpop.xlane.xlu1 %335 }
 0x1b4   :  { %v341_v36 = vpop.xlane.xlu1 %340 }
 0x1b5   :  { %v342_v37 = vmax.f32 %v336_v35, %v341_v36 }
 0x1b7   :  { %v346_v38 = vsub.f32 %v338_v33, %v342_v37  ;;  %v343_v42 = vsub.f32 %v336_v35, %v342_v37 }
 0x1b9   :  { %v347_v39 = vmul.f32 1.442695, %v346_v38  ;;  %v344_v43 = vmul.f32 1.442695, %v343_v42 }
 0x1bb   :  { %373 = vpow2.f32 %v347_v39 }
 0x1bc   :  { %375 = vpow2.f32 %v344_v43 }
 0x1c1   :  { %v374_v40 = vpop.eup %373 }
 0x1c2   :  { %v349_v41 = vsel %vm43_vm1, %v374_v40, 0.0  ;;  %v376_v44 = vpop.eup %375 }
 0x1c3   :  { %350 = vadd.xlane.f32.xlu2 %v349_v41 }
 0x236   :  { %v351_v45 = vpop.xlane.xlu2 %350 }
 0x237   :  { %v352_v46 = vadd.f32 %v376_v44, %v351_v45 }
 0x239   :  { %377 = vlog2.f32 %v352_v46 }
 0x23f   :  { %v378_v47 = vpop.eup %377 }
 0x240   :  { %v354_v48 = vmul.f32 0.6931472, %v378_v47 }
 0x242   :  { %v355_v49 = vadd.f32 %v354_v48, %v342_v37 }
 0x244   :  { %v356_v50 = vsub.f32 %v355_v49, %v336_v35 }
 0x246   :  { %357 = vst.msk [vmem:[%s475_s2] sm:$0xff] %vm45_vm0, %v356_v50 }
 0x247   :  { %362 = vsyncpa [#allocation6], 1 }
 0x248   :  { %363 = vsyncpa [#allocation8], 1 }

</bundles_post_ra>
